<compile_context>
chip_gen: v5e
topology: v5e:2x2
jax: 0.10.0
libtpu: 0.0.40
codegen_flags: <defaults>
</compile_context>

<pallas_src>
import jax
import jax.numpy as jnp
from jax.experimental import pallas as pl
from jax.experimental.pallas import tpu as pltpu

IN_FEATURES = 10
OUT_FEATURES = 2
LANE = 128                       # batch tile must be a multiple of the lane width
MAX_TB = 64 * 1024               # max batch-tile (lane) width per grid step
MIN_GRID_STEPS = 4               # keep >=4 steps when B is large: pipelining + 2 TCs (v7x)
VMEM_LIMIT_BYTES = 32 * 1024 * 1024


def _round_up(a: int, m: int) -> int:
    return ((a + m - 1) // m) * m


def _linear_sigmoid_kernel(xT_ref, w_ref, b_ref, oT_ref):
    # xT_ref: VMEM (10, TB) -- batch on the lane axis (lane-dense)
    # w_ref : SMEM (2, 10)  -- scalar reads
    # b_ref : SMEM (2,)     -- scalar reads
    # oT_ref: VMEM (2, TB)  -- lane-dense output (unmasked stores)
    tb = xT_ref.shape[1]
    acc0 = jnp.zeros((1, tb), jnp.float32) + b_ref[0]
    acc1 = jnp.zeros((1, tb), jnp.float32) + b_ref[1]
    # Single pass over the 10 input rows; each row is read exactly once and
    # feeds both accumulators (20 VPU broadcast-FMAs total).
    for k in range(IN_FEATURES):
        row = xT_ref[k:k + 1, :].astype(jnp.float32)        # (1, TB)
        acc0 = acc0 + w_ref[0, k] * row
        acc1 = acc1 + w_ref[1, k] * row
    # Write the two output rows directly (no concatenate / sublane shuffle).
    oT_ref[0:1, :] = jax.nn.sigmoid(acc0).astype(oT_ref.dtype)
    oT_ref[1:2, :] = jax.nn.sigmoid(acc1).astype(oT_ref.dtype)


def nonlinear_forward(x, weight, bias):
    """x: (B, ...) flattening to (B, 10); weight: (2, 10); bias: (2,) -> (B, 2)."""
    B = x.shape[0]
    x2d = x.reshape(B, -1)                                   # nn.Flatten (keeps batch)
    assert x2d.shape[1] == IN_FEATURES, "Linear expects 10 input features"

    # SMEM holds 32-bit scalars: make sure the 22 parameters are f32.
    weight = weight.astype(jnp.float32)
    bias = bias.astype(jnp.float32)

    # Batch tile selection: as large as possible (amortize the ~0.35 us fixed
    # per-grid-step overhead), but clamped so big batches keep >= 4 grid steps.
    b_lanes = _round_up(B, LANE)
    tb_target = _round_up(pl.cdiv(b_lanes, MIN_GRID_STEPS), LANE)
    TB = max(LANE, min(MAX_TB, tb_target))                   # multiple of 128
    Bp = _round_up(B, TB)

    # Transpose so batch is the lane axis; pad to a tile multiple.  XLA fuses
    # the pad into the transpose copy, so this is a single extra HBM pass.
    # (Best long-term fix per review: keep activations feature-major upstream
    # so this pass disappears entirely.)
    xT = jnp.pad(x2d.T, ((0, 0), (0, Bp - B)))               # (10, Bp), zero-padded

    grid = (Bp // TB,)

    oT = pl.pallas_call(
        _linear_sigmoid_kernel,
        out_shape=jax.ShapeDtypeStruct((OUT_FEATURES, Bp), x2d.dtype),
        grid_spec=pltpu.PrefetchScalarGridSpec(
            num_scalar_prefetch=0,
            grid=grid,
            in_specs=[
                # (10, TB): sublane dim == full extent (10), lane dim = TB
                # (multiple of 128) -> valid, lane-dense block.
                pl.BlockSpec((IN_FEATURES, TB), lambda i: (0, i)),
                # 22 parameters live in SMEM -> scalar reads, no padded VMEM
                # tiles and no per-step weight DMA.
                pl.BlockSpec(memory_space=pltpu.MemorySpace.SMEM),
                pl.BlockSpec(memory_space=pltpu.MemorySpace.SMEM),
            ],
            out_specs=pl.BlockSpec((OUT_FEATURES, TB), lambda i: (0, i)),
        ),
        compiler_params=pltpu.CompilerParams(
            # Pure batch-parallel grid (no reduction axis): megacore sharding
            # on v7x; near-neutral (but harmless) on single-TC v5e/v6e.
            dimension_semantics=("parallel",),
            # Covers the double-buffered (10,TB)+(2,TB) tiles on all chips
            # (v5e scoped default is only 16 MiB).
            vmem_limit_bytes=VMEM_LIMIT_BYTES,
        ),
    )(xT, weight, bias)

    # Zero-padded batch columns compute sigmoid(bias) and are sliced off here.
    return oT[:, :B].T                                       # (B, 2)


if __name__ == "__main__":
    key = jax.random.PRNGKey(0)
    kx, kw, kb = jax.random.split(key, 3)

    # Small input whose flatten yields 10 features: (batch=8, 2, 5).
    x = jax.random.normal(kx, (8, 2, 5), dtype=jnp.float32)

    # Deterministic parameter init (PyTorch Linear(10, 2) shapes).
    bound = 1.0 / jnp.sqrt(10.0)
    weight = jax.random.uniform(kw, (2, 10), minval=-bound, maxval=bound,
                                dtype=jnp.float32)
    bias = jax.random.uniform(kb, (2,), minval=-bound, maxval=bound,
                              dtype=jnp.float32)

    out = nonlinear_forward(x, weight, bias)
    out = jax.block_until_ready(out)

    # Sanity check against plain-JAX reference.
    ref = jax.nn.sigmoid(x.reshape(8, -1) @ weight.T + bias)
    assert out.shape == (8, 2)
    assert jnp.allclose(out, ref, atol=1e-5, rtol=1e-5), (
        "max abs err = %s" % jnp.max(jnp.abs(out - ref)))

    print("KERNEL_OK")
</pallas_src>

<mosaic_0001>
module attributes {stable_mosaic.version = 11 : i64} {
  func.func @_linear_sigmoid_kernel(%arg0: i32, %arg1: memref<10x128xf32, #tpu.memory_space<vmem>>, %arg2: memref<2x10xf32, #tpu.memory_space<smem>>, %arg3: memref<2xf32, #tpu.memory_space<smem>>, %arg4: memref<2x128xf32, #tpu.memory_space<vmem>>) attributes {dimension_semantics = [#tpu.dimension_semantics<parallel>], iteration_bounds = array<i64: 1>, scalar_prefetch = 0 : i64, scratch_operands = 0 : i64, tpu.core_type = #tpu.core_type<tc>, window_params = [{transform_indices = @transform_0, window_bounds = array<i64: 10, 128>}, {transform_indices = @transform_1, window_bounds = array<i64: 2, 10>}, {transform_indices = @transform_2, window_bounds = array<i64: 2>}, {transform_indices = @transform_3, window_bounds = array<i64: 2, 128>}]} {
    %cst = arith.constant 0.000000e+00 : f32
    %0 = vector.broadcast %cst : f32 to vector<1x128xf32>
    %c0 = arith.constant 0 : index
    %1 = memref.load %arg3[%c0] : memref<2xf32, #tpu.memory_space<smem>>
    %2 = vector.broadcast %1 : f32 to vector<1x128xf32>
    %3 = arith.addf %0, %2 : vector<1x128xf32>
    %cst_0 = arith.constant 0.000000e+00 : f32
    %4 = vector.broadcast %cst_0 : f32 to vector<1x128xf32>
    %c1 = arith.constant 1 : index
    %5 = memref.load %arg3[%c1] : memref<2xf32, #tpu.memory_space<smem>>
    %6 = vector.broadcast %5 : f32 to vector<1x128xf32>
    %7 = arith.addf %4, %6 : vector<1x128xf32>
    %c0_1 = arith.constant 0 : index
    %c0_2 = arith.constant 0 : index
    %8 = vector.load %arg1[%c0_1, %c0_2] : memref<10x128xf32, #tpu.memory_space<vmem>>, vector<1x128xf32>
    %c0_3 = arith.constant 0 : index
    %c0_4 = arith.constant 0 : index
    %9 = memref.load %arg2[%c0_3, %c0_4] : memref<2x10xf32, #tpu.memory_space<smem>>
    %10 = vector.broadcast %9 : f32 to vector<1x128xf32>
    %11 = arith.mulf %10, %8 : vector<1x128xf32>
    %12 = arith.addf %3, %11 : vector<1x128xf32>
    %c1_5 = arith.constant 1 : index
    %c0_6 = arith.constant 0 : index
    %13 = memref.load %arg2[%c1_5, %c0_6] : memref<2x10xf32, #tpu.memory_space<smem>>
    %14 = vector.broadcast %13 : f32 to vector<1x128xf32>
    %15 = arith.mulf %14, %8 : vector<1x128xf32>
    %16 = arith.addf %7, %15 : vector<1x128xf32>
    %c1_7 = arith.constant 1 : index
    %c0_8 = arith.constant 0 : index
    %17 = vector.load %arg1[%c1_7, %c0_8] : memref<10x128xf32, #tpu.memory_space<vmem>>, vector<1x128xf32>
    %c0_9 = arith.constant 0 : index
    %c1_10 = arith.constant 1 : index
    %18 = memref.load %arg2[%c0_9, %c1_10] : memref<2x10xf32, #tpu.memory_space<smem>>
    %19 = vector.broadcast %18 : f32 to vector<1x128xf32>
    %20 = arith.mulf %19, %17 : vector<1x128xf32>
    %21 = arith.addf %12, %20 : vector<1x128xf32>
    %c1_11 = arith.constant 1 : index
    %c1_12 = arith.constant 1 : index
    %22 = memref.load %arg2[%c1_11, %c1_12] : memref<2x10xf32, #tpu.memory_space<smem>>
    %23 = vector.broadcast %22 : f32 to vector<1x128xf32>
    %24 = arith.mulf %23, %17 : vector<1x128xf32>
    %25 = arith.addf %16, %24 : vector<1x128xf32>
    %c2 = arith.constant 2 : index
    %c0_13 = arith.constant 0 : index
    %26 = vector.load %arg1[%c2, %c0_13] : memref<10x128xf32, #tpu.memory_space<vmem>>, vector<1x128xf32>
    %c0_14 = arith.constant 0 : index
    %c2_15 = arith.constant 2 : index
    %27 = memref.load %arg2[%c0_14, %c2_15] : memref<2x10xf32, #tpu.memory_space<smem>>
    %28 = vector.broadcast %27 : f32 to vector<1x128xf32>
    %29 = arith.mulf %28, %26 : vector<1x128xf32>
    %30 = arith.addf %21, %29 : vector<1x128xf32>
    %c1_16 = arith.constant 1 : index
    %c2_17 = arith.constant 2 : index
    %31 = memref.load %arg2[%c1_16, %c2_17] : memref<2x10xf32, #tpu.memory_space<smem>>
    %32 = vector.broadcast %31 : f32 to vector<1x128xf32>
    %33 = arith.mulf %32, %26 : vector<1x128xf32>
    %34 = arith.addf %25, %33 : vector<1x128xf32>
    %c3 = arith.constant 3 : index
    %c0_18 = arith.constant 0 : index
    %35 = vector.load %arg1[%c3, %c0_18] : memref<10x128xf32, #tpu.memory_space<vmem>>, vector<1x128xf32>
    %c0_19 = arith.constant 0 : index
    %c3_20 = arith.constant 3 : index
    %36 = memref.load %arg2[%c0_19, %c3_20] : memref<2x10xf32, #tpu.memory_space<smem>>
    %37 = vector.broadcast %36 : f32 to vector<1x128xf32>
    %38 = arith.mulf %37, %35 : vector<1x128xf32>
    %39 = arith.addf %30, %38 : vector<1x128xf32>
    %c1_21 = arith.constant 1 : index
    %c3_22 = arith.constant 3 : index
    %40 = memref.load %arg2[%c1_21, %c3_22] : memref<2x10xf32, #tpu.memory_space<smem>>
    %41 = vector.broadcast %40 : f32 to vector<1x128xf32>
    %42 = arith.mulf %41, %35 : vector<1x128xf32>
    %43 = arith.addf %34, %42 : vector<1x128xf32>
    %c4 = arith.constant 4 : index
    %c0_23 = arith.constant 0 : index
    %44 = vector.load %arg1[%c4, %c0_23] : memref<10x128xf32, #tpu.memory_space<vmem>>, vector<1x128xf32>
    %c0_24 = arith.constant 0 : index
    %c4_25 = arith.constant 4 : index
    %45 = memref.load %arg2[%c0_24, %c4_25] : memref<2x10xf32, #tpu.memory_space<smem>>
    %46 = vector.broadcast %45 : f32 to vector<1x128xf32>
    %47 = arith.mulf %46, %44 : vector<1x128xf32>
    %48 = arith.addf %39, %47 : vector<1x128xf32>
    %c1_26 = arith.constant 1 : index
    %c4_27 = arith.constant 4 : index
    %49 = memref.load %arg2[%c1_26, %c4_27] : memref<2x10xf32, #tpu.memory_space<smem>>
    %50 = vector.broadcast %49 : f32 to vector<1x128xf32>
    %51 = arith.mulf %50, %44 : vector<1x128xf32>
    %52 = arith.addf %43, %51 : vector<1x128xf32>
    %c5 = arith.constant 5 : index
    %c0_28 = arith.constant 0 : index
    %53 = vector.load %arg1[%c5, %c0_28] : memref<10x128xf32, #tpu.memory_space<vmem>>, vector<1x128xf32>
    %c0_29 = arith.constant 0 : index
    %c5_30 = arith.constant 5 : index
    %54 = memref.load %arg2[%c0_29, %c5_30] : memref<2x10xf32, #tpu.memory_space<smem>>
    %55 = vector.broadcast %54 : f32 to vector<1x128xf32>
    %56 = arith.mulf %55, %53 : vector<1x128xf32>
    %57 = arith.addf %48, %56 : vector<1x128xf32>
    %c1_31 = arith.constant 1 : index
    %c5_32 = arith.constant 5 : index
    %58 = memref.load %arg2[%c1_31, %c5_32] : memref<2x10xf32, #tpu.memory_space<smem>>
    %59 = vector.broadcast %58 : f32 to vector<1x128xf32>
    %60 = arith.mulf %59, %53 : vector<1x128xf32>
    %61 = arith.addf %52, %60 : vector<1x128xf32>
    %c6 = arith.constant 6 : index
    %c0_33 = arith.constant 0 : index
    %62 = vector.load %arg1[%c6, %c0_33] : memref<10x128xf32, #tpu.memory_space<vmem>>, vector<1x128xf32>
    %c0_34 = arith.constant 0 : index
    %c6_35 = arith.constant 6 : index
    %63 = memref.load %arg2[%c0_34, %c6_35] : memref<2x10xf32, #tpu.memory_space<smem>>
    %64 = vector.broadcast %63 : f32 to vector<1x128xf32>
    %65 = arith.mulf %64, %62 : vector<1x128xf32>
    %66 = arith.addf %57, %65 : vector<1x128xf32>
    %c1_36 = arith.constant 1 : index
    %c6_37 = arith.constant 6 : index
    %67 = memref.load %arg2[%c1_36, %c6_37] : memref<2x10xf32, #tpu.memory_space<smem>>
    %68 = vector.broadcast %67 : f32 to vector<1x128xf32>
    %69 = arith.mulf %68, %62 : vector<1x128xf32>
    %70 = arith.addf %61, %69 : vector<1x128xf32>
    %c7 = arith.constant 7 : index
    %c0_38 = arith.constant 0 : index
    %71 = vector.load %arg1[%c7, %c0_38] : memref<10x128xf32, #tpu.memory_space<vmem>>, vector<1x128xf32>
    %c0_39 = arith.constant 0 : index
    %c7_40 = arith.constant 7 : index
    %72 = memref.load %arg2[%c0_39, %c7_40] : memref<2x10xf32, #tpu.memory_space<smem>>
    %73 = vector.broadcast %72 : f32 to vector<1x128xf32>
    %74 = arith.mulf %73, %71 : vector<1x128xf32>
    %75 = arith.addf %66, %74 : vector<1x128xf32>
    %c1_41 = arith.constant 1 : index
    %c7_42 = arith.constant 7 : index
    %76 = memref.load %arg2[%c1_41, %c7_42] : memref<2x10xf32, #tpu.memory_space<smem>>
    %77 = vector.broadcast %76 : f32 to vector<1x128xf32>
    %78 = arith.mulf %77, %71 : vector<1x128xf32>
    %79 = arith.addf %70, %78 : vector<1x128xf32>
    %c8 = arith.constant 8 : index
    %c0_43 = arith.constant 0 : index
    %80 = vector.load %arg1[%c8, %c0_43] : memref<10x128xf32, #tpu.memory_space<vmem>>, vector<1x128xf32>
    %c0_44 = arith.constant 0 : index
    %c8_45 = arith.constant 8 : index
    %81 = memref.load %arg2[%c0_44, %c8_45] : memref<2x10xf32, #tpu.memory_space<smem>>
    %82 = vector.broadcast %81 : f32 to vector<1x128xf32>
    %83 = arith.mulf %82, %80 : vector<1x128xf32>
    %84 = arith.addf %75, %83 : vector<1x128xf32>
    %c1_46 = arith.constant 1 : index
    %c8_47 = arith.constant 8 : index
    %85 = memref.load %arg2[%c1_46, %c8_47] : memref<2x10xf32, #tpu.memory_space<smem>>
    %86 = vector.broadcast %85 : f32 to vector<1x128xf32>
    %87 = arith.mulf %86, %80 : vector<1x128xf32>
    %88 = arith.addf %79, %87 : vector<1x128xf32>
    %c9 = arith.constant 9 : index
    %c0_48 = arith.constant 0 : index
    %89 = vector.load %arg1[%c9, %c0_48] : memref<10x128xf32, #tpu.memory_space<vmem>>, vector<1x128xf32>
    %c0_49 = arith.constant 0 : index
    %c9_50 = arith.constant 9 : index
    %90 = memref.load %arg2[%c0_49, %c9_50] : memref<2x10xf32, #tpu.memory_space<smem>>
    %91 = vector.broadcast %90 : f32 to vector<1x128xf32>
    %92 = arith.mulf %91, %89 : vector<1x128xf32>
    %93 = arith.addf %84, %92 : vector<1x128xf32>
    %c1_51 = arith.constant 1 : index
    %c9_52 = arith.constant 9 : index
    %94 = memref.load %arg2[%c1_51, %c9_52] : memref<2x10xf32, #tpu.memory_space<smem>>
    %95 = vector.broadcast %94 : f32 to vector<1x128xf32>
    %96 = arith.mulf %95, %89 : vector<1x128xf32>
    %97 = arith.addf %88, %96 : vector<1x128xf32>
    %98 = arith.negf %93 : vector<1x128xf32>
    %99 = math.exp %98 : vector<1x128xf32>
    %cst_53 = arith.constant 1.000000e+00 : f32
    %100 = vector.broadcast %cst_53 : f32 to vector<1x128xf32>
    %101 = arith.addf %100, %99 : vector<1x128xf32>
    %102 = arith.divf %100, %101 : vector<1x128xf32>
    %c0_54 = arith.constant 0 : index
    %c0_55 = arith.constant 0 : index
    %103 = vector.load %arg4[%c0_54, %c0_55] : memref<2x128xf32, #tpu.memory_space<vmem>>, vector<1x128xf32>
    tpu.vector_store %arg4[%c0_54, %c0_55], %102 {strides = array<i32>} : memref<2x128xf32, #tpu.memory_space<vmem>>, vector<1x128xf32>,
    %104 = arith.negf %97 : vector<1x128xf32>
    %105 = math.exp %104 : vector<1x128xf32>
    %cst_56 = arith.constant 1.000000e+00 : f32
    %106 = vector.broadcast %cst_56 : f32 to vector<1x128xf32>
    %107 = arith.addf %106, %105 : vector<1x128xf32>
    %108 = arith.divf %106, %107 : vector<1x128xf32>
    %c1_57 = arith.constant 1 : index
    %c0_58 = arith.constant 0 : index
    %109 = vector.load %arg4[%c1_57, %c0_58] : memref<2x128xf32, #tpu.memory_space<vmem>>, vector<1x128xf32>
    tpu.vector_store %arg4[%c1_57, %c0_58], %108 {strides = array<i32>} : memref<2x128xf32, #tpu.memory_space<vmem>>, vector<1x128xf32>,
    return
  }
  func.func @transform_0(%arg0: i32) -> (i32, i32) {
    %c0_i32 = arith.constant 0 : i32
    %c0_i32_0 = arith.constant 0 : i32
    return %c0_i32, %arg0 : i32, i32
  }
  func.func @transform_1(%arg0: i32) -> (i32, i32) {
    %c0_i32 = arith.constant 0 : i32
    %c0_i32_0 = arith.constant 0 : i32
    %c0_i32_1 = arith.constant 0 : i32
    return %c0_i32, %c0_i32_0 : i32, i32
  }
  func.func @transform_2(%arg0: i32) -> i32 {
    %c0_i32 = arith.constant 0 : i32
    %c0_i32_0 = arith.constant 0 : i32
    return %c0_i32 : i32
  }
  func.func @transform_3(%arg0: i32) -> (i32, i32) {
    %c0_i32 = arith.constant 0 : i32
    %c0_i32_0 = arith.constant 0 : i32
    return %c0_i32, %arg0 : i32, i32
  }
}

</mosaic_0001>

<bundles_post_ra>
// kernel: tpu_custom_call.1
= control target key start
LH: loop header
LB: loop body
LE: loop exit
PB: predicated region body
PF: predicated region fallthrough
CT: control target
= control target key end

     0   :  { %8 = vsyncpa [#allocation3], 0  ;;  %s395_s0 = inlined_call_operand.hbm [shape: f32[10,128], index: 0, kind: input, shape index: {}]   ;;  %s396_s1 = inlined_call_operand.hbm [shape: f32[2,10], index: 1, kind: input, shape index: {}]   ;;  %s397_s2 = inlined_call_operand.vmem [shape: f32[2], index: 2, kind: input, shape index: {}]   ;;  %s398_s3 = inlined_call_operand.hbm [shape: f32[2,128], index: 3, kind: output, shape index: {}]  }
   0x1   :  { %9 = vsyncpa [#allocation5], 0 }
   0x2   :  { %10 = vsyncpa [#allocation6], 0 }
   0x3   :  { %11 = vsyncpa [#allocation4], 0  ;;  %s16_s14 = sshll.u32 %s395_s0, 4  ;;  %s327_s15 = smov [#allocation2]   ;;  %s17_s14 = int_to_ptr.hbm [resolvable:$true] %s16_s14 }
   0x4   :  { %s18_s16 = sshll.u32 %s327_s15, 4  ;;  %s30_s19 = sshll.u32 %s396_s1, 4  ;;  %s19_s16 = int_to_ptr.vmem [resolvable:$true] %s18_s16  ;;  %s31_s19 = int_to_ptr.hbm [resolvable:$true] %s30_s19 }
   0x5   :  { %s328_s20 = smov 128   ;;  %s329_s21 = smov 8  }
   0x6   :  { %24 = dma.hbm_to_vmem [thread:$0]  %s17_s14, 256, %s19_s16, [#allocation3], %s328_s20, %s328_s20, %s329_s21  }
   0x7   :  { %s330_s22 = smov [#allocation7]   ;;  %s39_s25 = sshll.u32 %s397_s2, 4  ;;  %s40_s25 = int_to_ptr.vmem [resolvable:$true] %s39_s25 }
   0x8   :  { %33 = dma.hbm_to_smem %s31_s19, 32, %s330_s22, [#allocation5]  }
   0x9   :  { %s331_s0 = smov [#allocation8]  }
   0xa   :  { %42 = dma.vmem_to_smem %s40_s25, 16, %s331_s0, [#allocation6]  }
   0xb   :  { %319 = dma.done.wait [#allocation3], 256  }
   0xc   :  { %320 = vsyncadd [#allocation3], 4294967040 }
   0xd   :  { %321 = dma.done.wait [#allocation5], 32  }
   0xe   :  { %322 = vsyncadd [#allocation5], 4294967264 }
   0xf   :  { %323 = dma.done.wait [#allocation6], 16  }
  0x10   :  { %324 = vsyncadd [#allocation6], 4294967280 }
  0x11   :  { %55 = sfence }
  0x12   :  { %s56_s1 = sld [smem:[#allocation8]]  ;;  %v62_v0 = vld [vmem:[#allocation2] sm:$0x1]  ;;  %v71_v1 = vld [vmem:[#allocation2 + $0x1] sm:$0x1]  ;;  %s332_s19 = smov [#allocation9]  }
  0x13   :  { %s63_s26 = sld [smem:[#allocation7]]  ;;  %v80_v4 = vld [vmem:[#allocation2 + $0x2] sm:$0x1]  ;;  %v89_v9 = vld [vmem:[#allocation2 + $0x3] sm:$0x1]  ;;  %s197_s20 = sshll.u32 %s332_s19, 4  ;;  %s198_s20 = int_to_ptr.vmem [resolvable:$true] %s197_s20 }
  0x14   :  { %s213_s27 = sld [smem:[#allocation7 + $0x1]]  ;;  %v98_v13 = vld [vmem:[#allocation2 + $0x4] sm:$0x1]  ;;  %v107_v17 = vld [vmem:[#allocation2 + $0x5] sm:$0x1]  ;;  %s199_s23 = sshll.u32 %s398_s3, 4  ;;  %s200_s23 = int_to_ptr.hbm [resolvable:$true] %s199_s23 }
  0x15   :  { %s215_s28 = sld [smem:[#allocation7 + $0x2]]  ;;  %v116_v21 = vld [vmem:[#allocation2 + $0x6] sm:$0x1]  ;;  %v125_v25 = vld [vmem:[#allocation2 + $0x7] sm:$0x1] }
  0x16   :  { %s217_s29 = sld [smem:[#allocation7 + $0x3]]  ;;  %v134_v31 = vld [vmem:[#allocation2 + $0x8] sm:$0x1]  ;;  %v143_v39 = vld [vmem:[#allocation2 + $0x9] sm:$0x1] }
  0x17   :  { %s219_s30 = sld [smem:[#allocation7 + $0x4]] }
  0x18   :  { %s362_s4 = sld [smem:[#allocation7 + $0x5]]  ;;  %v57_v2 = vstv %s56_s1 }
  0x19   :  { %v64_v3 = vstv %s63_s26  ;;  %s364_s2 = sld [smem:[#allocation7 + $0x6]] }
  0x1a   :  { %v65_v5 = vmul.f32 %v64_v3, %v62_v0  ;;  %v73_v6 = vstv %s213_s27  ;;  %s366_s5 = sld [smem:[#allocation7 + $0x7]] }
  0x1b   :  { %v74_v7 = vmul.f32 %v73_v6, %v71_v1  ;;  %v82_v8 = vstv %s215_s28  ;;  %s368_s6 = sld [smem:[#allocation7 + $0x8]] }
  0x1c   :  { %v66_v10 = vadd.f32 %v65_v5, %v57_v2  ;;  %v83_v11 = vmul.f32 %v82_v8, %v80_v4  ;;  %v91_v12 = vstv %s217_s29  ;;  %s370_s7 = sld [smem:[#allocation7 + $0x9]] }
  0x1d   :  { %v100_v14 = vstv %s219_s30  ;;  %s372_s8 = sld [smem:[#allocation8 + $0x1]]  ;;  %v92_v16 = vmul.f32 %v91_v12, %v89_v9 }
  0x1e   :  { %v75_v15 = vadd.f32 %v74_v7, %v66_v10  ;;  %s212_s9 = sld [smem:[#allocation7 + $0x80]]  ;;  %v109_v18 = vstv %s362_s4  ;;  %v101_v20 = vmul.f32 %v100_v14, %v98_v13 }
  0x1f   :  { %s214_s10 = sld [smem:[#allocation7 + $0x81]]  ;;  %v118_v22 = vstv %s364_s2  ;;  %v110_v24 = vmul.f32 %v109_v18, %v107_v17 }
  0x20   :  { %v84_v19 = vadd.f32 %v83_v11, %v75_v15  ;;  %s216_s11 = sld [smem:[#allocation7 + $0x82]]  ;;  %v127_v26 = vstv %s366_s5  ;;  %v119_v28 = vmul.f32 %v118_v22, %v116_v21 }
  0x21   :  { %s376_s12 = sld [smem:[#allocation7 + $0x83]]  ;;  %v136_v32 = vstv %s368_s6  ;;  %v128_v36 = vmul.f32 %v127_v26, %v125_v25 }
  0x22   :  { %v93_v23 = vadd.f32 %v92_v16, %v84_v19  ;;  %s378_s13 = sld [smem:[#allocation7 + $0x84]]  ;;  %v145_v40 = vstv %s370_s7  ;;  %v137_v45 = vmul.f32 %v136_v32, %v134_v31 }
  0x23   :  { %s381_s14 = sld [smem:[#allocation7 + $0x85]]  ;;  %v60_v29 = vstv %s372_s8  ;;  %v146_v50 = vmul.f32 %v145_v40, %v143_v39 }
  0x24   :  { %v102_v27 = vadd.f32 %v101_v20, %v93_v23  ;;  %v68_v30 = vstv %s212_s9  ;;  %s384_s15 = sld [smem:[#allocation7 + $0x86]] }
  0x25   :  { %v69_v33 = vmul.f32 %v68_v30, %v62_v0  ;;  %v77_v34 = vstv %s214_s10  ;;  %s226_s16 = sld [smem:[#allocation7 + $0x87]] }
  0x26   :  { %v111_v35 = vadd.f32 %v110_v24, %v102_v27  ;;  %v78_v37 = vmul.f32 %v77_v34, %v71_v1  ;;  %v86_v38 = vstv %s216_s11  ;;  %s228_s17 = sld [smem:[#allocation7 + $0x88]] }
  0x27   :  { %v70_v41 = vadd.f32 %v69_v33, %v60_v29  ;;  %v87_v42 = vmul.f32 %v86_v38, %v80_v4  ;;  %v95_v43 = vstv %s376_s12  ;;  %s230_s18 = sld [smem:[#allocation7 + $0x89]] }
  0x28   :  { %v120_v44 = vadd.f32 %v119_v28, %v111_v35  ;;  %v104_v46 = vstv %s378_s13  ;;  %v96_v48 = vmul.f32 %v95_v43, %v89_v9 }
  0x29   :  { %v79_v47 = vadd.f32 %v78_v37, %v70_v41  ;;  %v113_v51 = vstv %s381_s14  ;;  %v105_v53 = vmul.f32 %v104_v46, %v98_v13 }
  0x2a   :  { %v129_v49 = vadd.f32 %v128_v36, %v120_v44  ;;  %v122_v55 = vstv %s384_s15  ;;  %v114_v57 = vmul.f32 %v113_v51, %v107_v17 }
  0x2b   :  { %v88_v52 = vadd.f32 %v87_v42, %v79_v47  ;;  %v131_v59 = vstv %s226_s16  ;;  %v123_v61 = vmul.f32 %v122_v55, %v116_v21 }
  0x2c   :  { %v138_v54 = vadd.f32 %v137_v45, %v129_v49  ;;  %v140_v63 = vstv %s228_s17  ;;  %v132_v1 = vmul.f32 %v131_v59, %v125_v25 }
  0x2d   :  { %v97_v56 = vadd.f32 %v96_v48, %v88_v52  ;;  %v149_v2 = vstv %s230_s18  ;;  %v141_v4 = vmul.f32 %v140_v63, %v134_v31 }
  0x2e   :  { %v147_v58 = vadd.f32 %v146_v50, %v138_v54  ;;  %v150_v6 = vmul.f32 %v149_v2, %v143_v39 }
  0x2f   :  { %v106_v60 = vadd.f32 %v105_v53, %v97_v56 }
  0x30   :  { %v231_v62 = vmul.f32 -1.442695, %v147_v58 }
  0x31   :  { %v115_v0 = vadd.f32 %v114_v57, %v106_v60 }
  0x32   :  { %239 = vpow2.f32 %v231_v62 }
  0x33   :  { %v124_v3 = vadd.f32 %v123_v61, %v115_v0 }
  0x35   :  { %v133_v5 = vadd.f32 %v132_v1, %v124_v3 }
  0x37   :  { %v142_v7 = vadd.f32 %v141_v4, %v133_v5 }
  0x38   :  { %v240_v8 = vpop.eup %239 }
  0x39   :  { %v155_v9 = vadd.f32 1.0, %v240_v8  ;;  %v151_v10 = vadd.f32 %v150_v6, %v142_v7 }
  0x3b   :  { %241 = vrcp.f32 %v155_v9  ;;  %v232_v11 = vmul.f32 -1.442695, %v151_v10  ;;  %v167_v14 = vand.u32 2147483648, %v155_v9  ;;  %vm161_vm0 = vweird.f32 %v155_v9 }
  0x3c   :  { %v165_v17 = vand.u32 2147483647, %v155_v9 }
  0x3d   :  { %243 = vpow2.f32 %v232_v11  ;;  %v168_v20 = vor.u32 1.1754944e-38, %v167_v14 }
  0x3e   :  { %vm166_vm3 = vcmp.eq.f32.partialorder %v165_v17, 8.507059e+37 }
  0x41   :  { %v242_v12 = vpop.eup %241 }
  0x42   :  { %v157_v13 = vmul.f32 %v242_v12, %v155_v9  ;;  %vm162_vm1 = vweird.f32 %v242_v12 }
  0x43   :  { %v244_v15 = vpop.eup %243  ;;  %vm163_vm2 = vmor %vm161_vm0, %vm162_vm1 }
  0x44   :  { %v158_v16 = vsub.f32 1.0, %v157_v13  ;;  %v175_v18 = vadd.f32 1.0, %v244_v15 }
  0x46   :  { %v159_v19 = vmul.f32 %v242_v12, %v158_v16  ;;  %245 = vrcp.f32 %v175_v18  ;;  %v187_v26 = vand.u32 2147483648, %v175_v18  ;;  %vm181_vm4 = vweird.f32 %v175_v18 }
  0x47   :  { %v185_v28 = vand.u32 2147483647, %v175_v18 }
  0x48   :  { %v160_v21 = vadd.f32 %v242_v12, %v159_v19  ;;  %v188_v30 = vor.u32 1.1754944e-38, %v187_v26 }
  0x49   :  { %vm186_vm7 = vcmp.eq.f32.partialorder %v185_v28, 8.507059e+37 }
  0x4a   :  { %v164_v22 = vsel %vm163_vm2, %v242_v12, %v160_v21 }
  0x4b   :  { %v169_v23 = vsel %vm166_vm3, %v168_v20, %v164_v22 }
  0x4c   :  { %171 = vst [vmem:[#allocation9] sm:$0x1] %v169_v23  ;;  %v246_v24 = vpop.eup %245 }
  0x4d   :  { %v177_v25 = vmul.f32 %v246_v24, %v175_v18  ;;  %vm182_vm5 = vweird.f32 %v246_v24 }
  0x4e   :  { %vm183_vm6 = vmor %vm181_vm4, %vm182_vm5 }
  0x4f   :  { %v178_v27 = vsub.f32 1.0, %v177_v25 }
  0x51   :  { %v179_v29 = vmul.f32 %v246_v24, %v178_v27 }
  0x53   :  { %v180_v31 = vadd.f32 %v246_v24, %v179_v29 }
  0x55   :  { %v184_v32 = vsel %vm183_vm6, %v246_v24, %v180_v31 }
  0x56   :  { %v189_v33 = vsel %vm186_vm7, %v188_v30, %v184_v32 }
  0x57   :  { %191 = vst [vmem:[#allocation9 + $0x1] sm:$0x1] %v189_v33 }
  0x58   :  { %202 = dma.vmem_to_hbm [thread:$0]  %s198_s20, 32, %s200_s23, [#allocation4]  }
  0x59   :  { %325 = dma.done.wait [#allocation4], 32  }
  0x5a   :  { %326 = vsyncadd [#allocation4], 4294967264 }
  0x5b   :  { %207 = vsyncpa [#allocation3], 1 }
  0x5c   :  { %208 = vsyncpa [#allocation4], 1 }
  0x5d   :  { %209 = vsyncpa [#allocation5], 1 }
  0x5e   :  { %210 = vsyncpa [#allocation6], 1 }

</bundles_post_ra>
